<compile_context>
chip_gen: v5e
topology: v5e:2x2
jax: 0.10.0
libtpu: 0.0.40
codegen_flags: <defaults>
</compile_context>

<pallas_src>
import math
import functools

import jax
import jax.numpy as jnp
from jax.experimental import pallas as pl
from jax.experimental.pallas import tpu as pltpu

EPS = 1e-5  # PyTorch LayerNorm default eps


# ----------------------------- kernel -------------------------------------- #

def _layernorm(x, w, b):
    mu = jnp.mean(x, axis=-1, keepdims=True)
    var = jnp.mean((x - mu) ** 2, axis=-1, keepdims=True)
    return (x - mu) * jax.lax.rsqrt(var + EPS) * w + b


def fused_transformer_kernel(
        x_ref, pe_ref,
        wqkv_ref, bqkv_ref, wo_ref, w1_ref, b1_ref, w2_ref, small_ref,
        out_ref, x_scr, *, nhead, bb, seq, scale):
    """Whole forward for one batch block; grid = (B // Bb, nlayers)."""
    layer = pl.program_id(1)
    nlayers = pl.num_programs(1)

    E = x_scr.shape[-1]
    hd = E // nhead
    M = bb * seq
    inv_sqrt_hd = 1.0 / math.sqrt(hd)

    # Layer 0: embedding scale + positional encoding.
    # TODO(synk): dropout (p=0.5) is omitted — forward implemented in eval mode.
    @pl.when(layer == 0)
    def _():
        x0 = x_ref[...].astype(jnp.float32) * scale + pe_ref[...][None, :, :]
        x_scr[...] = x0.reshape(M, E)

    x = x_scr[...]                                   # [M, E] resident activation
    xb = x.astype(jnp.bfloat16)

    # ---- fused QKV: one lane-dense bf16 matmul, f32 accumulation ---------- #
    qkv = jnp.dot(xb, wqkv_ref[...],
                  preferred_element_type=jnp.float32) + bqkv_ref[...]  # [M, 3E]

    def split_heads(col0):           # -> [H*Bb, S, hd] bf16, batch enum = (h, b)
        return jnp.stack(
            [qkv[:, col0 + h * hd: col0 + (h + 1) * hd].reshape(bb, seq, hd)
             for h in range(nhead)], axis=0
        ).reshape(nhead * bb, seq, hd).astype(jnp.bfloat16)

    q = split_heads(0)
    k = split_heads(E)
    v = split_heads(2 * E)

    # ---- scaled dot-product attention, (head, batch) in the einsum batch dim
    s = jnp.einsum('nqd,nkd->nqk', q, k,
                   preferred_element_type=jnp.float32) * inv_sqrt_hd
    s = s - jnp.max(s, axis=-1, keepdims=True)
    p = jnp.exp(s)
    p = p * pl.reciprocal(jnp.sum(p, axis=-1, keepdims=True), approx=True)
    ctx = jnp.einsum('nqk,nkd->nqd', p.astype(jnp.bfloat16), v,
                     preferred_element_type=jnp.float32)       # [H*Bb, S, hd]

    # Concatenate heads back to [M, E]; ONE [M,E] @ [E,E] output projection.
    ctx4 = ctx.reshape(nhead, bb, seq, hd)
    ctx2d = jnp.concatenate([ctx4[h] for h in range(nhead)],
                            axis=-1).reshape(M, E)
    sm = small_ref[...]              # packed rows: bo, ln1_w, ln1_b, b2, ln2_w, ln2_b
    attn_out = jnp.dot(ctx2d.astype(jnp.bfloat16), wo_ref[...],
                       preferred_element_type=jnp.float32) + sm[0:1, :]

    # Residual + LayerNorm 1 (post-norm, PyTorch default) — f32 math.
    h1 = _layernorm(x + attn_out, sm[1:2, :], sm[2:3, :])

    # Feed-forward: relu(h1 @ W1 + b1) @ W2 + b2 (bf16 operands, f32 accumulate).
    ff = jnp.dot(h1.astype(jnp.bfloat16), w1_ref[...],
                 preferred_element_type=jnp.float32) + b1_ref[...]
    ff = jnp.maximum(ff, 0.0)
    ff = jnp.dot(ff.astype(jnp.bfloat16), w2_ref[...],
                 preferred_element_type=jnp.float32) + sm[3:4, :]

    out = _layernorm(h1 + ff, sm[4:5, :], sm[5:6, :])          # [M, E] f32
    x_scr[...] = out                                 # carry to next layer

    # Last layer: mean over sequence -> this batch block's [Bb, E] output rows.
    @pl.when(layer == nlayers - 1)
    def _():
        out_ref[...] = jnp.mean(out.reshape(bb, seq, E),
                                axis=1).astype(out_ref.dtype)


# ----------------------------- wrapper -------------------------------------- #

def fused_transformer_forward(x_emb, pe, sp, *, nhead, block_b=None):
    """x_emb: [B, S, E] embedded tokens (unscaled); pe: [S, E]; returns [B, E]."""
    B, S, E = x_emb.shape
    L = sp['wqkv'].shape[0]
    d_hid = sp['w1'].shape[-1]

    # Batch blocking: whole batch per step for small B; for large B pick Bb as a
    # multiple of 8 (BlockSpec constraint) and keep B//Bb even on v7x (2 TCs).
    bb = B if block_b is None else block_b
    assert B % bb == 0, "batch must be divisible by the batch block"
    nb = B // bb

    def wspec(shape):               # layer-stacked weight, one slab per layer step
        return pl.BlockSpec((None,) + shape,
                            lambda i, l: (l,) + (0,) * len(shape))

    in_specs = [
        pl.BlockSpec((bb, S, E), lambda i, l: (i, 0, 0)),        # x_emb (batch block)
        pl.BlockSpec((S, E), lambda i, l: (0, 0)),               # pe
        wspec((E, 3 * E)),                                       # wqkv  (bf16)
        wspec((1, 3 * E)),                                       # bqkv
        wspec((E, E)),                                           # wo    (bf16)
        wspec((E, d_hid)),                                       # w1    (bf16)
        wspec((1, d_hid)),                                       # b1
        wspec((d_hid, E)),                                       # w2    (bf16)
        wspec((6, E)),                                           # packed small params
    ]

    return pl.pallas_call(
        functools.partial(fused_transformer_kernel, nhead=nhead, bb=bb,
                          seq=S, scale=math.sqrt(E)),
        out_shape=jax.ShapeDtypeStruct((B, E), x_emb.dtype),
        grid=(nb, L),
        in_specs=in_specs,
        out_specs=pl.BlockSpec((bb, E), lambda i, l: (i, 0)),
        scratch_shapes=[pltpu.VMEM((bb * S, E), jnp.float32)],   # resident activation
        compiler_params=pltpu.CompilerParams(
            dimension_semantics=("parallel", "arbitrary"),
            # Explicit VMEM budget: safe on all gens (v7x has 64 MiB physical).
            vmem_limit_bytes=48 * 1024 * 1024),
    )(x_emb, pe, sp['wqkv'], sp['bqkv'], sp['wo'], sp['w1'], sp['b1'],
      sp['w2'], sp['small'])


# ----------------------------- model glue ----------------------------------- #

def make_positional_encoding(max_len, embed_dim):
    position = jnp.arange(max_len, dtype=jnp.float32)[:, None]
    div_term = jnp.exp(jnp.arange(0, embed_dim, 2, dtype=jnp.float32)
                       * (-math.log(10000.0) / embed_dim))
    pe = jnp.zeros((max_len, embed_dim), dtype=jnp.float32)
    pe = pe.at[:, 0::2].set(jnp.sin(position * div_term))
    pe = pe.at[:, 1::2].set(jnp.cos(position * div_term))
    return pe  # [max_len, E]


def init_params(key, vocab_size, embed_dim, d_hid, nlayers, nhead):
    initrange = 0.1
    E = embed_dim
    keys = jax.random.split(key, 1 + nlayers)

    def u(k, shape):
        return jax.random.uniform(k, shape, jnp.float32,
                                  minval=-initrange, maxval=initrange)

    params = {'embedding': u(keys[0], (vocab_size, E))}

    names = ('wqkv', 'bqkv', 'wo', 'w1', 'b1', 'w2', 'small')
    stk = {n: [] for n in names}
    for li in range(nlayers):
        ks = jax.random.split(keys[1 + li], 6)
        wq, wk, wv = u(ks[0], (E, E)), u(ks[1], (E, E)), u(ks[2], (E, E))
        # Fused QKV packed [E, 3E]: x @ Wqkv == concat(x@Wq.T, x@Wk.T, x@Wv.T).
        stk['wqkv'].append(jnp.concatenate([wq.T, wk.T, wv.T], axis=1)
                           .astype(jnp.bfloat16))
        stk['bqkv'].append(jnp.zeros((1, 3 * E), jnp.float32))
        stk['wo'].append(u(ks[3], (E, E)).T.astype(jnp.bfloat16))   # [E, E]
        stk['w1'].append(u(ks[4], (E, d_hid)).astype(jnp.bfloat16))
        stk['b1'].append(jnp.zeros((1, d_hid), jnp.float32))
        stk['w2'].append(u(ks[5], (d_hid, E)).astype(jnp.bfloat16))
        # Packed small per-layer params: bo, ln1_w, ln1_b, b2, ln2_w, ln2_b.
        stk['small'].append(jnp.stack([
            jnp.zeros((E,), jnp.float32),   # bo
            jnp.ones((E,), jnp.float32),    # ln1_w
            jnp.zeros((E,), jnp.float32),   # ln1_b
            jnp.zeros((E,), jnp.float32),   # b2
            jnp.ones((E,), jnp.float32),    # ln2_w
            jnp.zeros((E,), jnp.float32),   # ln2_b
        ], axis=0))

    params['stacked'] = {k: jnp.stack(v, axis=0) for k, v in stk.items()}
    return params


def transformer_model_forward(src, params, pe_table, embed_dim, nhead):
    """src: int tokens [S, B] -> output [B, E] (mean over sequence)."""
    S, B = src.shape
    emb = params['embedding'][src]          # [S, B, E] gather (plain-JAX glue)
    x = jnp.transpose(emb, (1, 0, 2))       # [B, S, E] kernel layout
    pe = pe_table[:S]                       # [S, E]
    return fused_transformer_forward(x, pe, params['stacked'], nhead=nhead)


# ----------------------------- main ------------------------------------------ #

if __name__ == "__main__":
    vocab_size = 50
    embed_dim = 32
    nhead = 4
    d_hid = 64
    nlayers = 2
    max_len = 64
    seq_len = 8
    batch = 2

    key = jax.random.PRNGKey(0)
    k_param, k_tok = jax.random.split(key)

    params = init_params(k_param, vocab_size, embed_dim, d_hid, nlayers, nhead)
    pe_table = make_positional_encoding(max_len, embed_dim)

    src = jax.random.randint(k_tok, (seq_len, batch), 0, vocab_size,
                             dtype=jnp.int32)

    out = transformer_model_forward(src, params, pe_table, embed_dim, nhead)
    out = jax.block_until_ready(out)

    assert out.shape == (batch, embed_dim), out.shape
    assert bool(jnp.all(jnp.isfinite(out)))
    print("KERNEL_OK")
</pallas_src>

<mosaic_0001>
module attributes {stable_mosaic.version = 11 : i64} {
  func.func @fused_transformer_kernel(%arg0: i32, %arg1: i32, %arg2: memref<2x8x32xf32, #tpu.memory_space<vmem>>, %arg3: memref<8x32xf32, #tpu.memory_space<vmem>>, %arg4: memref<1x32x96xbf16, #tpu.memory_space<vmem>>, %arg5: memref<1x1x96xf32, #tpu.memory_space<vmem>>, %arg6: memref<1x32x32xbf16, #tpu.memory_space<vmem>>, %arg7: memref<1x32x64xbf16, #tpu.memory_space<vmem>>, %arg8: memref<1x1x64xf32, #tpu.memory_space<vmem>>, %arg9: memref<1x64x32xbf16, #tpu.memory_space<vmem>>, %arg10: memref<1x6x32xf32, #tpu.memory_space<vmem>>, %arg11: memref<2x32xf32, #tpu.memory_space<vmem>>, %arg12: memref<16x32xf32, #tpu.memory_space<vmem>>) attributes {dimension_semantics = [#tpu.dimension_semantics<parallel>, #tpu.dimension_semantics<arbitrary>], iteration_bounds = array<i64: 1, 2>, scalar_prefetch = 0 : i64, scratch_operands = 1 : i64, tpu.core_type = #tpu.core_type<tc>, window_params = [{transform_indices = @transform_0, window_bounds = array<i64: 2, 8, 32>}, {pipeline_mode = #tpu.pipeline_mode<synchronous>, transform_indices = @transform_1, window_bounds = array<i64: 8, 32>}, {transform_indices = @transform_2, window_bounds = array<i64: 1, 32, 96>}, {transform_indices = @transform_3, window_bounds = array<i64: 1, 1, 96>}, {transform_indices = @transform_4, window_bounds = array<i64: 1, 32, 32>}, {transform_indices = @transform_5, window_bounds = array<i64: 1, 32, 64>}, {transform_indices = @transform_6, window_bounds = array<i64: 1, 1, 64>}, {transform_indices = @transform_7, window_bounds = array<i64: 1, 64, 32>}, {transform_indices = @transform_8, window_bounds = array<i64: 1, 6, 32>}, {transform_indices = @transform_9, window_bounds = array<i64: 2, 32>}]} {
    %c0_i32 = arith.constant 0 : i32
    %0 = arith.cmpi eq, %arg1, %c0_i32 : i32
    %1 = arith.extui %0 : i1 to i32
    %c0_i32_0 = arith.constant 0 : i32
    %2 = arith.cmpi ne, %1, %c0_i32_0 : i32
    scf.if %2 {
      %c0_45 = arith.constant 0 : index
      %c0_46 = arith.constant 0 : index
      %c0_47 = arith.constant 0 : index
      %163 = vector.load %arg2[%c0_45, %c0_46, %c0_47] : memref<2x8x32xf32, #tpu.memory_space<vmem>>, vector<2x8x32xf32>
      %cst_48 = arith.constant 5.65685415 : f32
      %164 = vector.broadcast %cst_48 : f32 to vector<2x8x32xf32>
      %165 = arith.mulf %163, %164 : vector<2x8x32xf32>
      %c0_49 = arith.constant 0 : index
      %c0_50 = arith.constant 0 : index
      %166 = vector.load %arg3[%c0_49, %c0_50] : memref<8x32xf32, #tpu.memory_space<vmem>>, vector<8x32xf32>
      %167 = vector.shape_cast %166 : vector<8x32xf32> to vector<1x8x32xf32>
      %168 = vector.broadcast %167 : vector<1x8x32xf32> to vector<2x8x32xf32>
      %169 = arith.addf %165, %168 : vector<2x8x32xf32>
      %170 = vector.shape_cast %169 : vector<2x8x32xf32> to vector<16x32xf32>
      %c0_51 = arith.constant 0 : index
      %c0_52 = arith.constant 0 : index
      %171 = vector.load %arg12[%c0_51, %c0_52] : memref<16x32xf32, #tpu.memory_space<vmem>>, vector<16x32xf32>
      tpu.vector_store %arg12[%c0_51, %c0_52], %170 {strides = array<i32>} : memref<16x32xf32, #tpu.memory_space<vmem>>, vector<16x32xf32>,
    } else {
    }
    %c0 = arith.constant 0 : index
    %c0_1 = arith.constant 0 : index
    %3 = vector.load %arg12[%c0, %c0_1] : memref<16x32xf32, #tpu.memory_space<vmem>>, vector<16x32xf32>
    %4 = arith.truncf %3 : vector<16x32xf32> to vector<16x32xbf16>
    %c0_2 = arith.constant 0 : index
    %c0_3 = arith.constant 0 : index
    %c0_4 = arith.constant 0 : index
    %5 = vector.load %arg4[%c0_2, %c0_3, %c0_4] : memref<1x32x96xbf16, #tpu.memory_space<vmem>>, vector<1x32x96xbf16>
    %6 = vector.shape_cast %5 : vector<1x32x96xbf16> to vector<32x96xbf16>
    %cst = arith.constant dense<0.000000e+00> : vector<16x96xf32>
    %7 = tpu.matmul %4, %6, %cst {dimension_numbers = #tpu.dot_dimension_numbers<[1], [0], [0], [1], [0, 0, 1, 1], [], []>} : vector<16x32xbf16>, vector<32x96xbf16>, vector<16x96xf32> -> vector<16x96xf32>
    %c0_5 = arith.constant 0 : index
    %c0_6 = arith.constant 0 : index
    %c0_7 = arith.constant 0 : index
    %8 = vector.load %arg5[%c0_5, %c0_6, %c0_7] : memref<1x1x96xf32, #tpu.memory_space<vmem>>, vector<1x1x96xf32>
    %9 = vector.shape_cast %8 : vector<1x1x96xf32> to vector<1x96xf32>
    %10 = vector.broadcast %9 : vector<1x96xf32> to vector<16x96xf32>
    %11 = arith.addf %7, %10 : vector<16x96xf32>
    %12 = vector.extract_strided_slice %11 {offsets = [0, 0], sizes = [16, 8], strides = [1, 1]} : vector<16x96xf32> to vector<16x8xf32>
    %13 = vector.shape_cast %12 : vector<16x8xf32> to vector<2x8x8xf32>
    %14 = vector.extract_strided_slice %11 {offsets = [0, 8], sizes = [16, 8], strides = [1, 1]} : vector<16x96xf32> to vector<16x8xf32>
    %15 = vector.shape_cast %14 : vector<16x8xf32> to vector<2x8x8xf32>
    %16 = vector.extract_strided_slice %11 {offsets = [0, 16], sizes = [16, 8], strides = [1, 1]} : vector<16x96xf32> to vector<16x8xf32>
    %17 = vector.shape_cast %16 : vector<16x8xf32> to vector<2x8x8xf32>
    %18 = vector.extract_strided_slice %11 {offsets = [0, 24], sizes = [16, 8], strides = [1, 1]} : vector<16x96xf32> to vector<16x8xf32>
    %19 = vector.shape_cast %18 : vector<16x8xf32> to vector<2x8x8xf32>
    %20 = vector.shape_cast %13 : vector<2x8x8xf32> to vector<1x2x8x8xf32>
    %21 = vector.shape_cast %15 : vector<2x8x8xf32> to vector<1x2x8x8xf32>
    %22 = vector.shape_cast %17 : vector<2x8x8xf32> to vector<1x2x8x8xf32>
    %23 = vector.shape_cast %19 : vector<2x8x8xf32> to vector<1x2x8x8xf32>
    %24 = tpu.concatenate %20, %21, %22, %23 in 0 : vector<1x2x8x8xf32>, vector<1x2x8x8xf32>, vector<1x2x8x8xf32>, vector<1x2x8x8xf32> -> vector<4x2x8x8xf32>
    %25 = vector.shape_cast %24 : vector<4x2x8x8xf32> to vector<8x8x8xf32>
    %26 = arith.truncf %25 : vector<8x8x8xf32> to vector<8x8x8xbf16>
    %27 = vector.extract_strided_slice %11 {offsets = [0, 32], sizes = [16, 8], strides = [1, 1]} : vector<16x96xf32> to vector<16x8xf32>
    %28 = vector.shape_cast %27 : vector<16x8xf32> to vector<2x8x8xf32>
    %29 = vector.extract_strided_slice %11 {offsets = [0, 40], sizes = [16, 8], strides = [1, 1]} : vector<16x96xf32> to vector<16x8xf32>
    %30 = vector.shape_cast %29 : vector<16x8xf32> to vector<2x8x8xf32>
    %31 = vector.extract_strided_slice %11 {offsets = [0, 48], sizes = [16, 8], strides = [1, 1]} : vector<16x96xf32> to vector<16x8xf32>
    %32 = vector.shape_cast %31 : vector<16x8xf32> to vector<2x8x8xf32>
    %33 = vector.extract_strided_slice %11 {offsets = [0, 56], sizes = [16, 8], strides = [1, 1]} : vector<16x96xf32> to vector<16x8xf32>
    %34 = vector.shape_cast %33 : vector<16x8xf32> to vector<2x8x8xf32>
    %35 = vector.shape_cast %28 : vector<2x8x8xf32> to vector<1x2x8x8xf32>
    %36 = vector.shape_cast %30 : vector<2x8x8xf32> to vector<1x2x8x8xf32>
    %37 = vector.shape_cast %32 : vector<2x8x8xf32> to vector<1x2x8x8xf32>
    %38 = vector.shape_cast %34 : vector<2x8x8xf32> to vector<1x2x8x8xf32>
    %39 = tpu.concatenate %35, %36, %37, %38 in 0 : vector<1x2x8x8xf32>, vector<1x2x8x8xf32>, vector<1x2x8x8xf32>, vector<1x2x8x8xf32> -> vector<4x2x8x8xf32>
    %40 = vector.shape_cast %39 : vector<4x2x8x8xf32> to vector<8x8x8xf32>
    %41 = arith.truncf %40 : vector<8x8x8xf32> to vector<8x8x8xbf16>
    %42 = vector.extract_strided_slice %11 {offsets = [0, 64], sizes = [16, 8], strides = [1, 1]} : vector<16x96xf32> to vector<16x8xf32>
    %43 = vector.shape_cast %42 : vector<16x8xf32> to vector<2x8x8xf32>
    %44 = vector.extract_strided_slice %11 {offsets = [0, 72], sizes = [16, 8], strides = [1, 1]} : vector<16x96xf32> to vector<16x8xf32>
    %45 = vector.shape_cast %44 : vector<16x8xf32> to vector<2x8x8xf32>
    %46 = vector.extract_strided_slice %11 {offsets = [0, 80], sizes = [16, 8], strides = [1, 1]} : vector<16x96xf32> to vector<16x8xf32>
    %47 = vector.shape_cast %46 : vector<16x8xf32> to vector<2x8x8xf32>
    %48 = vector.extract_strided_slice %11 {offsets = [0, 88], sizes = [16, 8], strides = [1, 1]} : vector<16x96xf32> to vector<16x8xf32>
    %49 = vector.shape_cast %48 : vector<16x8xf32> to vector<2x8x8xf32>
    %50 = vector.shape_cast %43 : vector<2x8x8xf32> to vector<1x2x8x8xf32>
    %51 = vector.shape_cast %45 : vector<2x8x8xf32> to vector<1x2x8x8xf32>
    %52 = vector.shape_cast %47 : vector<2x8x8xf32> to vector<1x2x8x8xf32>
    %53 = vector.shape_cast %49 : vector<2x8x8xf32> to vector<1x2x8x8xf32>
    %54 = tpu.concatenate %50, %51, %52, %53 in 0 : vector<1x2x8x8xf32>, vector<1x2x8x8xf32>, vector<1x2x8x8xf32>, vector<1x2x8x8xf32> -> vector<4x2x8x8xf32>
    %55 = vector.shape_cast %54 : vector<4x2x8x8xf32> to vector<8x8x8xf32>
    %56 = arith.truncf %55 : vector<8x8x8xf32> to vector<8x8x8xbf16>
    "tpu.trace_start"() <{level = 10 : i32, message = "nqd,nkd->nqk"}> : () -> ()
    %cst_8 = arith.constant dense<0.000000e+00> : vector<8x8x8xf32>
    %57 = tpu.matmul %26, %41, %cst_8 {dimension_numbers = #tpu.dot_dimension_numbers<[2], [2], [1], [1], [0, 0, 0, 1, 1, 1], [0], [0]>} : vector<8x8x8xbf16>, vector<8x8x8xbf16>, vector<8x8x8xf32> -> vector<8x8x8xf32>
    "tpu.trace_stop"() : () -> ()
    %cst_9 = arith.constant 0.353553385 : f32
    %58 = vector.broadcast %cst_9 : f32 to vector<8x8x8xf32>
    %59 = arith.mulf %57, %58 : vector<8x8x8xf32>
    %cst_10 = arith.constant dense<0xFF800000> : vector<8x8xf32>
    %60 = vector.multi_reduction <maximumf>, %59, %cst_10 [2] : vector<8x8x8xf32> to vector<8x8xf32>
    %61 = vector.shape_cast %60 : vector<8x8xf32> to vector<8x8x1xf32>
    %62 = vector.broadcast %61 : vector<8x8x1xf32> to vector<8x8x8xf32>
    %63 = arith.subf %59, %62 : vector<8x8x8xf32>
    %64 = math.exp %63 : vector<8x8x8xf32>
    %cst_11 = arith.constant dense<0.000000e+00> : vector<8x8xf32>
    %65 = vector.multi_reduction <add>, %64, %cst_11 [2] : vector<8x8x8xf32> to vector<8x8xf32>
    %66 = vector.shape_cast %65 : vector<8x8xf32> to vector<8x8x1xf32>
    %67 = tpu.reciprocal %66 {approx = true} : vector<8x8x1xf32> -> vector<8x8x1xf32>
    %68 = vector.broadcast %67 : vector<8x8x1xf32> to vector<8x8x8xf32>
    %69 = arith.mulf %64, %68 : vector<8x8x8xf32>
    %70 = arith.truncf %69 : vector<8x8x8xf32> to vector<8x8x8xbf16>
    "tpu.trace_start"() <{level = 10 : i32, message = "nqk,nkd->nqd"}> : () -> ()
    %cst_12 = arith.constant dense<0.000000e+00> : vector<8x8x8xf32>
    %71 = tpu.matmul %70, %56, %cst_12 {dimension_numbers = #tpu.dot_dimension_numbers<[2], [1], [1], [2], [0, 0, 0, 1, 1, 2], [0], [0]>} : vector<8x8x8xbf16>, vector<8x8x8xbf16>, vector<8x8x8xf32> -> vector<8x8x8xf32>
    "tpu.trace_stop"() : () -> ()
    %72 = vector.shape_cast %71 : vector<8x8x8xf32> to vector<4x2x8x8xf32>
    %73 = vector.extract_strided_slice %72 {offsets = [0, 0, 0, 0], sizes = [1, 2, 8, 8], strides = [1, 1, 1, 1]} : vector<4x2x8x8xf32> to vector<1x2x8x8xf32>
    %74 = vector.shape_cast %73 : vector<1x2x8x8xf32> to vector<2x8x8xf32>
    %75 = vector.extract_strided_slice %72 {offsets = [1, 0, 0, 0], sizes = [1, 2, 8, 8], strides = [1, 1, 1, 1]} : vector<4x2x8x8xf32> to vector<1x2x8x8xf32>
    %76 = vector.shape_cast %75 : vector<1x2x8x8xf32> to vector<2x8x8xf32>
    %77 = vector.extract_strided_slice %72 {offsets = [2, 0, 0, 0], sizes = [1, 2, 8, 8], strides = [1, 1, 1, 1]} : vector<4x2x8x8xf32> to vector<1x2x8x8xf32>
    %78 = vector.shape_cast %77 : vector<1x2x8x8xf32> to vector<2x8x8xf32>
    %79 = vector.extract_strided_slice %72 {offsets = [3, 0, 0, 0], sizes = [1, 2, 8, 8], strides = [1, 1, 1, 1]} : vector<4x2x8x8xf32> to vector<1x2x8x8xf32>
    %80 = vector.shape_cast %79 : vector<1x2x8x8xf32> to vector<2x8x8xf32>
    %81 = tpu.concatenate %74, %76, %78, %80 in 2 : vector<2x8x8xf32>, vector<2x8x8xf32>, vector<2x8x8xf32>, vector<2x8x8xf32> -> vector<2x8x32xf32>
    %82 = vector.shape_cast %81 : vector<2x8x32xf32> to vector<16x32xf32>
    %c0_13 = arith.constant 0 : index
    %c0_14 = arith.constant 0 : index
    %c0_15 = arith.constant 0 : index
    %83 = vector.load %arg10[%c0_13, %c0_14, %c0_15] : memref<1x6x32xf32, #tpu.memory_space<vmem>>, vector<1x6x32xf32>
    %84 = vector.shape_cast %83 : vector<1x6x32xf32> to vector<6x32xf32>
    %85 = arith.truncf %82 : vector<16x32xf32> to vector<16x32xbf16>
    %c0_16 = arith.constant 0 : index
    %c0_17 = arith.constant 0 : index
    %c0_18 = arith.constant 0 : index
    %86 = vector.load %arg6[%c0_16, %c0_17, %c0_18] : memref<1x32x32xbf16, #tpu.memory_space<vmem>>, vector<1x32x32xbf16>
    %87 = vector.shape_cast %86 : vector<1x32x32xbf16> to vector<32x32xbf16>
    %cst_19 = arith.constant dense<0.000000e+00> : vector<16x32xf32>
    %88 = tpu.matmul %85, %87, %cst_19 {dimension_numbers = #tpu.dot_dimension_numbers<[1], [0], [0], [1], [0, 0, 1, 1], [], []>} : vector<16x32xbf16>, vector<32x32xbf16>, vector<16x32xf32> -> vector<16x32xf32>
    %89 = vector.extract_strided_slice %84 {offsets = [0, 0], sizes = [1, 32], strides = [1, 1]} : vector<6x32xf32> to vector<1x32xf32>
    %90 = vector.broadcast %89 : vector<1x32xf32> to vector<16x32xf32>
    %91 = arith.addf %88, %90 : vector<16x32xf32>
    %92 = arith.addf %3, %91 : vector<16x32xf32>
    %93 = vector.extract_strided_slice %84 {offsets = [1, 0], sizes = [1, 32], strides = [1, 1]} : vector<6x32xf32> to vector<1x32xf32>
    %94 = vector.extract_strided_slice %84 {offsets = [2, 0], sizes = [1, 32], strides = [1, 1]} : vector<6x32xf32> to vector<1x32xf32>
    %cst_20 = arith.constant dense<0.000000e+00> : vector<16xf32>
    %95 = vector.multi_reduction <add>, %92, %cst_20 [1] : vector<16x32xf32> to vector<16xf32>
    %96 = vector.shape_cast %95 : vector<16xf32> to vector<16x1xf32>
    %cst_21 = arith.constant 3.200000e+01 : f32
    %97 = vector.broadcast %cst_21 : f32 to vector<16x1xf32>
    %98 = arith.divf %96, %97 : vector<16x1xf32>
    %99 = vector.broadcast %98 : vector<16x1xf32> to vector<16x32xf32>
    %100 = arith.subf %92, %99 : vector<16x32xf32>
    %101 = arith.mulf %100, %100 : vector<16x32xf32>
    %cst_22 = arith.constant dense<0.000000e+00> : vector<16xf32>
    %102 = vector.multi_reduction <add>, %101, %cst_22 [1] : vector<16x32xf32> to vector<16xf32>
    %103 = vector.shape_cast %102 : vector<16xf32> to vector<16x1xf32>
    %cst_23 = arith.constant 3.200000e+01 : f32
    %104 = vector.broadcast %cst_23 : f32 to vector<16x1xf32>
    %105 = arith.divf %103, %104 : vector<16x1xf32>
    %106 = vector.broadcast %98 : vector<16x1xf32> to vector<16x32xf32>
    %107 = arith.subf %92, %106 : vector<16x32xf32>
    %cst_24 = arith.constant 9.99999974E-6 : f32
    %108 = vector.broadcast %cst_24 : f32 to vector<16x1xf32>
    %109 = arith.addf %105, %108 : vector<16x1xf32>
    %110 = math.rsqrt %109 : vector<16x1xf32>
    %111 = vector.broadcast %110 : vector<16x1xf32> to vector<16x32xf32>
    %112 = arith.mulf %107, %111 : vector<16x32xf32>
    %113 = vector.broadcast %93 : vector<1x32xf32> to vector<16x32xf32>
    %114 = arith.mulf %112, %113 : vector<16x32xf32>
    %115 = vector.broadcast %94 : vector<1x32xf32> to vector<16x32xf32>
    %116 = arith.addf %114, %115 : vector<16x32xf32>
    %117 = arith.truncf %116 : vector<16x32xf32> to vector<16x32xbf16>
    %c0_25 = arith.constant 0 : index
    %c0_26 = arith.constant 0 : index
    %c0_27 = arith.constant 0 : index
    %118 = vector.load %arg7[%c0_25, %c0_26, %c0_27] : memref<1x32x64xbf16, #tpu.memory_space<vmem>>, vector<1x32x64xbf16>
    %119 = vector.shape_cast %118 : vector<1x32x64xbf16> to vector<32x64xbf16>
    %cst_28 = arith.constant dense<0.000000e+00> : vector<16x64xf32>
    %120 = tpu.matmul %117, %119, %cst_28 {dimension_numbers = #tpu.dot_dimension_numbers<[1], [0], [0], [1], [0, 0, 1, 1], [], []>} : vector<16x32xbf16>, vector<32x64xbf16>, vector<16x64xf32> -> vector<16x64xf32>
    %c0_29 = arith.constant 0 : index
    %c0_30 = arith.constant 0 : index
    %c0_31 = arith.constant 0 : index
    %121 = vector.load %arg8[%c0_29, %c0_30, %c0_31] : memref<1x1x64xf32, #tpu.memory_space<vmem>>, vector<1x1x64xf32>
    %122 = vector.shape_cast %121 : vector<1x1x64xf32> to vector<1x64xf32>
    %123 = vector.broadcast %122 : vector<1x64xf32> to vector<16x64xf32>
    %124 = arith.addf %120, %123 : vector<16x64xf32>
    %cst_32 = arith.constant 0.000000e+00 : f32
    %125 = vector.broadcast %cst_32 : f32 to vector<16x64xf32>
    %126 = arith.maximumf %124, %125 : vector<16x64xf32>
    %127 = arith.truncf %126 : vector<16x64xf32> to vector<16x64xbf16>
    %c0_33 = arith.constant 0 : index
    %c0_34 = arith.constant 0 : index
    %c0_35 = arith.constant 0 : index
    %128 = vector.load %arg9[%c0_33, %c0_34, %c0_35] : memref<1x64x32xbf16, #tpu.memory_space<vmem>>, vector<1x64x32xbf16>
    %129 = vector.shape_cast %128 : vector<1x64x32xbf16> to vector<64x32xbf16>
    %cst_36 = arith.constant dense<0.000000e+00> : vector<16x32xf32>
    %130 = tpu.matmul %127, %129, %cst_36 {dimension_numbers = #tpu.dot_dimension_numbers<[1], [0], [0], [1], [0, 0, 1, 1], [], []>} : vector<16x64xbf16>, vector<64x32xbf16>, vector<16x32xf32> -> vector<16x32xf32>
    %131 = vector.extract_strided_slice %84 {offsets = [3, 0], sizes = [1, 32], strides = [1, 1]} : vector<6x32xf32> to vector<1x32xf32>
    %132 = vector.broadcast %131 : vector<1x32xf32> to vector<16x32xf32>
    %133 = arith.addf %130, %132 : vector<16x32xf32>
    %134 = arith.addf %116, %133 : vector<16x32xf32>
    %135 = vector.extract_strided_slice %84 {offsets = [4, 0], sizes = [1, 32], strides = [1, 1]} : vector<6x32xf32> to vector<1x32xf32>
    %136 = vector.extract_strided_slice %84 {offsets = [5, 0], sizes = [1, 32], strides = [1, 1]} : vector<6x32xf32> to vector<1x32xf32>
    %cst_37 = arith.constant dense<0.000000e+00> : vector<16xf32>
    %137 = vector.multi_reduction <add>, %134, %cst_37 [1] : vector<16x32xf32> to vector<16xf32>
    %138 = vector.shape_cast %137 : vector<16xf32> to vector<16x1xf32>
    %cst_38 = arith.constant 3.200000e+01 : f32
    %139 = vector.broadcast %cst_38 : f32 to vector<16x1xf32>
    %140 = arith.divf %138, %139 : vector<16x1xf32>
    %141 = vector.broadcast %140 : vector<16x1xf32> to vector<16x32xf32>
    %142 = arith.subf %134, %141 : vector<16x32xf32>
    %143 = arith.mulf %142, %142 : vector<16x32xf32>
    %cst_39 = arith.constant dense<0.000000e+00> : vector<16xf32>
    %144 = vector.multi_reduction <add>, %143, %cst_39 [1] : vector<16x32xf32> to vector<16xf32>
    %145 = vector.shape_cast %144 : vector<16xf32> to vector<16x1xf32>
    %cst_40 = arith.constant 3.200000e+01 : f32
    %146 = vector.broadcast %cst_40 : f32 to vector<16x1xf32>
    %147 = arith.divf %145, %146 : vector<16x1xf32>
    %148 = vector.broadcast %140 : vector<16x1xf32> to vector<16x32xf32>
    %149 = arith.subf %134, %148 : vector<16x32xf32>
    %cst_41 = arith.constant 9.99999974E-6 : f32
    %150 = vector.broadcast %cst_41 : f32 to vector<16x1xf32>
    %151 = arith.addf %147, %150 : vector<16x1xf32>
    %152 = math.rsqrt %151 : vector<16x1xf32>
    %153 = vector.broadcast %152 : vector<16x1xf32> to vector<16x32xf32>
    %154 = arith.mulf %149, %153 : vector<16x32xf32>
    %155 = vector.broadcast %135 : vector<1x32xf32> to vector<16x32xf32>
    %156 = arith.mulf %154, %155 : vector<16x32xf32>
    %157 = vector.broadcast %136 : vector<1x32xf32> to vector<16x32xf32>
    %158 = arith.addf %156, %157 : vector<16x32xf32>
    %c0_42 = arith.constant 0 : index
    %c0_43 = arith.constant 0 : index
    %159 = vector.load %arg12[%c0_42, %c0_43] : memref<16x32xf32, #tpu.memory_space<vmem>>, vector<16x32xf32>
    tpu.vector_store %arg12[%c0_42, %c0_43], %158 {strides = array<i32>} : memref<16x32xf32, #tpu.memory_space<vmem>>, vector<16x32xf32>,
    %c1_i32 = arith.constant 1 : i32
    %160 = arith.cmpi eq, %arg1, %c1_i32 : i32
    %161 = arith.extui %160 : i1 to i32
    %c0_i32_44 = arith.constant 0 : i32
    %162 = arith.cmpi ne, %161, %c0_i32_44 : i32
    scf.if %162 {
      %163 = vector.shape_cast %158 : vector<16x32xf32> to vector<2x8x32xf32>
      %cst_45 = arith.constant dense<0.000000e+00> : vector<2x32xf32>
      %164 = vector.multi_reduction <add>, %163, %cst_45 [1] : vector<2x8x32xf32> to vector<2x32xf32>
      %cst_46 = arith.constant 8.000000e+00 : f32
      %165 = vector.broadcast %cst_46 : f32 to vector<2x32xf32>
      %166 = arith.divf %164, %165 : vector<2x32xf32>
      %c0_47 = arith.constant 0 : index
      %c0_48 = arith.constant 0 : index
      %167 = vector.load %arg11[%c0_47, %c0_48] : memref<2x32xf32, #tpu.memory_space<vmem>>, vector<2x32xf32>
      tpu.vector_store %arg11[%c0_47, %c0_48], %166 {strides = array<i32>} : memref<2x32xf32, #tpu.memory_space<vmem>>, vector<2x32xf32>,
    } else {
    }
    return
  }
  func.func @transform_0(%arg0: i32, %arg1: i32) -> (i32, i32, i32) {
    %c0_i32 = arith.constant 0 : i32
    %c0_i32_0 = arith.constant 0 : i32
    %c0_i32_1 = arith.constant 0 : i32
    return %arg0, %c0_i32, %c0_i32_0 : i32, i32, i32
  }
  func.func @transform_1(%arg0: i32, %arg1: i32) -> (i32, i32) {
    %c0_i32 = arith.constant 0 : i32
    %c0_i32_0 = arith.constant 0 : i32
    %c0_i32_1 = arith.constant 0 : i32
    return %c0_i32, %c0_i32_0 : i32, i32
  }
  func.func @transform_2(%arg0: i32, %arg1: i32) -> (i32, i32, i32) {
    %c0_i32 = arith.constant 0 : i32
    %c0_i32_0 = arith.constant 0 : i32
    %c0_i32_1 = arith.constant 0 : i32
    return %arg1, %c0_i32, %c0_i32_0 : i32, i32, i32
  }
  func.func @transform_3(%arg0: i32, %arg1: i32) -> (i32, i32, i32) {
    %c0_i32 = arith.constant 0 : i32
    %c0_i32_0 = arith.constant 0 : i32
    %c0_i32_1 = arith.constant 0 : i32
    return %arg1, %c0_i32, %c0_i32_0 : i32, i32, i32
  }
  func.func @transform_4(%arg0: i32, %arg1: i32) -> (i32, i32, i32) {
    %c0_i32 = arith.constant 0 : i32
    %c0_i32_0 = arith.constant 0 : i32
    %c0_i32_1 = arith.constant 0 : i32
    return %arg1, %c0_i32, %c0_i32_0 : i32, i32, i32
  }
  func.func @transform_5(%arg0: i32, %arg1: i32) -> (i32, i32, i32) {
    %c0_i32 = arith.constant 0 : i32
    %c0_i32_0 = arith.constant 0 : i32
    %c0_i32_1 = arith.constant 0 : i32
    return %arg1, %c0_i32, %c0_i32_0 : i32, i32, i32
  }
  func.func @transform_6(%arg0: i32, %arg1: i32) -> (i32, i32, i32) {
    %c0_i32 = arith.constant 0 : i32
    %c0_i32_0 = arith.constant 0 : i32
    %c0_i32_1 = arith.constant 0 : i32
    return %arg1, %c0_i32, %c0_i32_0 : i32, i32, i32
  }
  func.func @transform_7(%arg0: i32, %arg1: i32) -> (i32, i32, i32) {
    %c0_i32 = arith.constant 0 : i32
    %c0_i32_0 = arith.constant 0 : i32
    %c0_i32_1 = arith.constant 0 : i32
    return %arg1, %c0_i32, %c0_i32_0 : i32, i32, i32
  }
  func.func @transform_8(%arg0: i32, %arg1: i32) -> (i32, i32, i32) {
    %c0_i32 = arith.constant 0 : i32
    %c0_i32_0 = arith.constant 0 : i32
    %c0_i32_1 = arith.constant 0 : i32
    return %arg1, %c0_i32, %c0_i32_0 : i32, i32, i32
  }
  func.func @transform_9(%arg0: i32, %arg1: i32) -> (i32, i32) {
    %c0_i32 = arith.constant 0 : i32
    %c0_i32_0 = arith.constant 0 : i32
    return %arg0, %c0_i32 : i32, i32
  }
}

</mosaic_0001>

<bundles_post_ra>
// kernel: tpu_custom_call.1
= control target key start
LH: loop header
LB: loop body
LE: loop exit
PB: predicated region body
PF: predicated region fallthrough
CT: control target
= control target key end

     0   :  { %s2312_s0 = inlined_call_operand.hbm [shape: f32[2,8,32], index: 0, kind: input, shape index: {}]   ;;  %s2313_s1 = inlined_call_operand.hbm [shape: f32[8,32], index: 1, kind: input, shape index: {}]   ;;  %s2314_s2 = inlined_call_operand.vmem [shape: bf16[2,32,96], index: 2, kind: input, shape index: {}]   ;;  %s2315_s3 = inlined_call_operand.vmem [shape: f32[2,1,96], index: 3, kind: input, shape index: {}]   ;;  %s2316_s4 = inlined_call_operand.vmem [shape: bf16[2,32,32], index: 4, kind: input, shape index: {}]   ;;  %s2317_s5 = inlined_call_operand.vmem [shape: bf16[2,32,64], index: 5, kind: input, shape index: {}]   ;;  %s2318_s6 = inlined_call_operand.hbm [shape: f32[2,1,64], index: 6, kind: input, shape index: {}]   ;;  %s2319_s7 = inlined_call_operand.vmem [shape: bf16[2,64,32], index: 7, kind: input, shape index: {}]   ;;  %s2320_s8 = inlined_call_operand.vmem [shape: f32[2,6,32], index: 8, kind: input, shape index: {}]   ;;  %s2321_s9 = inlined_call_operand.hbm [shape: f32[2,32], index: 9, kind: output, shape index: {}]  }
   0x1   :  { %2324 = sst [smem:[#allocation16_spill]] %s2312_s0 }
   0x2   :  { %2325 = sst [smem:[#allocation17_spill]] %s2313_s1 }
   0x3   :  { %2326 = sst [smem:[#allocation18_spill]] %s2315_s3 }
   0x4   :  { %2327 = sst [smem:[#allocation19_spill]] %s2318_s6 }
   0x5   :  { %14 = vsyncpa [#allocation4], 0 }
   0x6   :  { %15 = vsyncpa [#allocation7], 0 }
   0x7   :  { %16 = vsyncpa [#allocation5], 0  ;;  %s2015_s30 = smov 0   ;;  %s2017_s10 = smov 0  }
   0x8   :  { %s2019_s11 = smov 0   ;;  %s2021_s12 = smov 0  }
   0x9   :  { %s2023_s13 = smov 0   ;;  %s2025_s14 = smov 0  }
   0xa LB: > { %2328 = sst [smem:[#allocation14_spill]] %s1944_s13  ;;  %s2046_s15 = sadd.s32 4294967295, %s1948_s14   ;;  %s1948_s14 = sphi %s2025_s14, %s22_s14   ;;  %s1944_s13 = sphi %s2023_s13, %s2337_s13   ;;  %s1940_s12 = sphi %s2021_s12, %s2336_s12   ;;  %s1936_s11 = sphi %s2019_s11, %s2340_s11   ;;  %s1932_s10 = sphi %s2017_s10, %s2339_s10   ;;  %s1928_s30 = sphi %s2015_s30, %s2338_s30  }
   0xb   : > { %p1516_p0 = scmp.ge.s32.totalorder %s1948_s14, 1  ;;  %p206_p1 = scmp.eq.s32.totalorder %s2046_s15, 0 }
   0xc   : > { %p294_p2 = scmp.lt.s32.totalorder %s1948_s14, 3  ;;  %s2329_s0 = sld [smem:[#allocation16_spill]] }
   0xd   : > { %s1950_s20 = smov [#allocation3]   ;;  %s2331_s1 = sld [smem:[#allocation17_spill]] }
   0xe   : > { %p2054_p3 = pnand %p1516_p0, %p294_p2  ;;  %s310_s21 = sshll.u32 %s1950_s20, 4  ;;  %s311_s21 = int_to_ptr.vmem [resolvable:$true] %s310_s21 }
   0xf   : > { %s1951_s25 = smov 128   ;;  %s1952_s26 = smov 8  }
  0x10   : > { %p1626_p4 = pneg %p2054_p3  ;;  %s1953_s27 = smov [#allocation6]  }
  0x11   : > { %s325_s28 = sshll.u32 %s1953_s27, 4  ;;  %s31_s29 = sadd.s32 1, %s1944_s13  ;;  %s326_s28 = int_to_ptr.vmem [resolvable:$true] %s325_s28 }
  0x12   : > { %s308_s18 = sshll.u32 %s2329_s0, 4  ;;  %p1627_p5 = pnand %p1626_p4, %p206_p1  ;;  %s309_s18 = int_to_ptr.hbm [resolvable:$true] %s308_s18 }
  0x13   : > { %s323_s24 = sshll.u32 %s2331_s1, 4  ;;  %p32_p6 = scmp.ge.s32.totalorder %s31_s29, 2  ;;  %s324_s24 = int_to_ptr.hbm [resolvable:$true] %s323_s24 }
  0x14   : > { %1629 = dma.hbm_to_vmem [thread:$0]  (!%p1627_p5), %s309_s18, 256, %s311_s21, [#allocation4], %s1951_s25, %s1951_s25, %s1952_s26  }
  0x15   : > { %1632 = dma.hbm_to_vmem [thread:$0]  (!%p1627_p5), %s324_s24, 128, %s326_s28, [#allocation7]  }
  0x16   : > { %p199_p7 = scmp.ne.s32.totalorder %s1936_s11, %s1932_s10  ;;  %p200_p8 = scmp.eq.s32.totalorder %s1948_s14, 0 }
  0x17   : > { %p205_p9 = scmp.ne.s32.totalorder %s1932_s10, %s1928_s30  ;;  %s2342_s29 = smov (%p32_p6, %s31_s29), 0 }
  0x18   : > { %2332 = sst [smem:[#allocation15_spill]] %s2342_s29  ;;  %s192_s16 = sadd.s32 1, %s1936_s11 }
  0x19   : > { %p2076_p10 = por %p206_p1, %p205_p9  ;;  %s189_s18 = ssub.s32 %s1944_s13, %s2342_s29 }
  0x1a   : > { %p201_p11 = por %p200_p8, %p199_p7  ;;  %p190_p12 = scmp.eq.s32.totalorder %s189_s18, 0 }
  0x1b   : > { %p1639_p13 = scmp.lt.s32.totalorder %s1948_s14, 2  ;;  %s366_s20 = sand.u32 1, %s1948_s14  }
  0x1c   : > { %s368_s21 = sand.u32 1, %s1936_s11   ;;  %s2334_s6 = sld [smem:[#allocation19_spill]] }
  0x1d   : > { %s2086_s22 = scalar_select %p190_p12, %s1936_s11, %s192_s16  }
  0x1e   : > { %s369_s26 = scalar_lea.vmem [#allocation8], %s368_s21  ;;  %p1634_p0 = pnand %p1639_p13, %p201_p11 }
  0x1f   : > { %s376_s27 = sshll.u32 %s369_s26, 4  ;;  %s367_s28 = scalar_lea.sflag [#allocation4], %s366_s20  ;;  %s377_s27 = int_to_ptr.vmem [resolvable:$true] %s376_s27 }
  0x20   : > { %400 = sbr.rel (%p2054_p3) target bundleno = 2116 (0x844), region = 56 }
  0x22   : > { %s372_s30 = scalar_lea.hbm %s2334_s6, %s1944_s13 }
  0x23   : > { %s374_s25 = sshll.u32 %s372_s30, 4  ;;  %s375_s25 = int_to_ptr.hbm [resolvable:$true] %s374_s25 }
  0x24   : > { %1636 = dma.hbm_to_vmem [thread:$0]  (!%p1634_p0), %s375_s25, 16, %s377_s27, %s367_s28  }
  0x25   : > { %1911 = dma.done.wait (%p206_p1), [#allocation4], 256  }
  0x26   : > { %1913 = vsyncadd (%p206_p1), [#allocation4], 4294967040 }
  0x27   : > { %1915 = dma.done.wait (%p206_p1), [#allocation7], 128  }
  0x28   : > { %1917 = vsyncadd (%p206_p1), [#allocation7], 4294967168  ;;  %s412_s16 = sand.u32 1, %s2046_s15   ;;  %s414_s18 = sand.u32 1, %s1932_s10  }
  0x29   : > { %s413_s20 = scalar_lea.sflag [#allocation4], %s412_s16  ;;  %s2104_s19 = scalar_lea.vmem [#allocation8], %s414_s18 }
  0x2a   : > { %1919 = dma.done.wait (%p2076_p10), %s413_s20, 16  }
  0x2b   : > { %1921 = vsyncadd (%p2076_p10), %s413_s20, 4294967280  ;;  %p473_p2 = scmp.lt.s32.totalorder %s1940_s12, 1  ;;  %s2335_s3 = sld [smem:[#allocation18_spill]] }
  0x2c   : > { %p1532_p1 = scmp.ne.s32.totalorder %s1940_s12, 0 }
  0x2d   : > { %s2112_s21 = scalar_select %p473_p2, %s1940_s12, 1 }
  0x2f   : > { %s1598_s23 = sshll.u32 %s2112_s21, 4  ;;  %s1601_s6 = sshll.u32 %s2112_s21, 5 }
  0x30   : > { %s477_s28 = scalar_lea.vmem %s2314_s2, %s1598_s23  ;;  %s2125_s18 = scalar_lea.vmem %s2316_s4, %s1598_s23 }
  0x31   : > { %s480_s25 = scalar_lea.vmem %s2335_s3, %s2112_s21  ;;  %s2130_s1 = scalar_lea.vmem %s2317_s5, %s1598_s23 }
  0x32   : > { %s2136_s24 = scalar_lea.vmem %s2319_s7, %s1601_s6  ;;  %s1531_s30 = sshll.u32 %s2112_s21, 3 }
  0x33   : > { %s2142_s27 = scalar_lea.vmem %s2320_s8, %s1531_s30  ;;  %504 = sbr.rel (%p1532_p1) target bundleno = 63 (0x3f), region = 72 }
  0x38   : > { %v505_v0 = vld [vmem:[#allocation3] sm:$0xff]  ;;  %v509_v1 = vld [vmem:[#allocation6] sm:$0xff]  ;;  %v506_v2 = vld [vmem:[#allocation3 + $0x8] sm:$0xff]  ;;  %vm512_vm0 = vcmask 261120  }
  0x39   : > { %v507_v3 = vmul.f32 5.656854, %v505_v0  ;;  %v508_v4 = vmul.f32 5.656854, %v506_v2 }
  0x3b   : > { %v510_v5 = vadd.f32 %v509_v1, %v507_v3  ;;  %v511_v6 = vadd.f32 %v509_v1, %v508_v4 }
  0x3d   : > { %513 = vst.msk [vmem:[#allocation2] sm:$0xff] %vm512_vm0, %v510_v5 }
  0x3e   : > { %514 = vst.msk [vmem:[#allocation2 + $0x8] sm:$0xff] %vm512_vm0, %v511_v6 }
  0x3f PF: > { %v1603_v7 = vld [vmem:[%s477_s28 + $0x8] sm:$0xff]  ;;  %v1602_v8 = vld [vmem:[%s477_s28] sm:$0xff]  ;;  %vm538_vm1 = vcmask 261120   ;;  %s1954_s0 = smov 112   ;;  %s1955_s3 = smov 120   ;;  %vm589_vm2 = vcmask 64512  }
  0x40   : > { %548 = vmatpush.bf16.msra.mxu0 %v1603_v7  ;;  %v1722_v12 = vld [vmem:[%s480_s25] ss:$0 sm:$0xff]  ;;  %s1956_s6 = smov 104   ;;  %s1957_s13 = smov 96   ;;  %vm886_vm3 = vcmask 1043456   ;;  %vm1076_vm4 = vcmask 130048  }
  0x41   : > { %s1958_s29 = smov 64   ;;  %s1959_s21 = smov 8   ;;  %vm1079_vm5 = vcmask 195584   ;;  %vm1251_vm13 = vcmask 523264  }
  0x42   : > { %s1960_s23 = smov 16   ;;  %s1961_s25 = smov 24  }
  0x43   : > { %p1593_p3 = scmp.ne.s32.totalorder %s1940_s12, 1 }
  0x44   : > { %v2145_v9 = vld [vmem:[#allocation2] sm:$0xff]  ;;  %549 = vmatpush.bf16.msra.mxu0 %v1602_v8 }
  0x45   : > { %v2147_v10 = vld [vmem:[#allocation2 + $0x8] sm:$0xff] }
  0x46   : > { %v517_v11 = vpack.c.bf16 %v2147_v10, %v2145_v9 }
  0x48   : > { %1541 = vmatmul.msk.bf16.vlgmr.msra.gmra.mxu0 %vm538_vm1, %v517_v11 }
  0xc5   : > { %v551_v13 = vpop.f32.mrf.mxu0 }
  0xc6   : > { %v552_v14 = vadd.f32 %v1722_v12, %v551_v13 }
  0xc8   : > { %564 = vrot.lane.b32.xlu2 %v552_v14, %s1954_s0  ;;  %558 = vrot.lane.b32.xlu0 %v552_v14, %s1955_s3  ;;  %v576_v17 = vpack.c.bf16 %v552_v14, %v552_v14 }
  0xca   : > { %v585_v19 = vunpack.c.l.b16 %v576_v17 }
  0xcc   : > { %v586_v21 = vpack.c.b16 %v585_v19, %v585_v19 }
  0xcd   : > { %v553_v15 = vpop.f32.mrf.mxu0 }
  0xce   : > { %v554_v16 = vadd.f32 %v1722_v12, %v553_v15 }
  0xd0   : > { %566 = vrot.lane.b32.xlu1 %v554_v16, %s1954_s0  ;;  %572 = vrot.lane.b32.xlu2 %v554_v16, %s1956_s6  ;;  %v577_v18 = vpack.c.bf16 %v554_v16, %v554_v16 }
  0xd1   : > { %560 = vrot.lane.b32.xlu0 %v554_v16, %s1955_s3 }
  0xd2   : > { %v610_v20 = vunpack.c.l.b16 %v577_v18 }
  0xd4   : > { %v611_v22 = vpack.c.b16 %v610_v20, %v610_v20 }
  0xd8   : > { %570 = vrot.lane.b32.xlu1 %v552_v14, %s1956_s6  ;;  %587 = vrot.lane.b32.xlu2 %v586_v21, %s1957_s13 }
  0xd9   : > { %612 = vrot.lane.b32.xlu0 %v611_v22, %s1957_s13 }
 0x122   : > { %v565_v23 = vpop.permute.xlu2 %564 }
 0x123   : > { %v580_v39 = vpack.c.bf16 %v565_v23, %v565_v23 }
 0x125   : > { %v682_v45 = vunpack.c.l.b16 %v580_v39 }
 0x127   : > { %v2170_v50 = vpack.c.b16 %v682_v45, %v682_v45 }
 0x12a   : > { %v573_v24 = vpop.permute.xlu2 %572 }
 0x12b   : > { %v2157_v37 = vpack.c.bf16 %v573_v24, %v573_v24 }
 0x12d   : > { %v754_v42 = vunpack.c.l.b16 %v2157_v37 }
 0x12f   : > { %v2166_v48 = vpack.c.b16 %v754_v42, %v754_v42 }
 0x132   : > { %v588_v25 = vpop.permute.xlu2 %587 }
 0x133   : > { %v594_v26 = vsel %vm589_vm2, %v588_v25, 0 }
 0x134   : > { %603 = vmatpush.bf16.xpose.msra.mxu1 %v594_v26 }
 0x13a   : > { %v559_v27 = vpop.permute.xlu0 %558 }
 0x13b   : > { %v578_v28 = vpack.c.bf16 %v559_v27, %v559_v27  ;;  %1542 = vmatmul.msk.bf16.vlgmr.msra.gmra.mxu1 %vm589_vm2, %v576_v17 }
 0x13d   : > { %v634_v29 = vunpack.c.l.b16 %v578_v28 }
 0x13f   : > { %v635_v30 = vpack.c.b16 %v634_v29, %v634_v29 }
 0x141   : > { %636 = vrot.lane.b32.xlu1 %v635_v30, %s1957_s13 }
 0x142   : > { %v567_v31 = vpop.permute.xlu1 %566 }
 0x143   : > { %v581_v32 = vpack.c.bf16 %v567_v31, %v567_v31  ;;  %v561_v33 = vpop.permute.xlu0 %560 }
 0x144   : > { %v579_v34 = vpack.c.bf16 %v561_v33, %v561_v33 }
 0x145   : > { %v706_v35 = vunpack.c.l.b16 %v581_v32 }
 0x146   : > { %v658_v36 = vunpack.c.l.b16 %v579_v34 }
 0x147   : > { %v2159_v38 = vpack.c.b16 %v706_v35, %v706_v35 }
 0x148   : > { %v659_v40 = vpack.c.b16 %v658_v36, %v658_v36 }
 0x149   : > { %708 = vrot.lane.b32.xlu1 %v2159_v38, %s1957_s13 }
 0x14a   : > { %660 = vrot.lane.b32.xlu0 %v659_v40, %s1957_s13  ;;  %v571_v41 = vpop.permute.xlu1 %570 }
 0x14b   : > { %v582_v43 = vpack.c.bf16 %v571_v41, %v571_v41  ;;  %v613_v44 = vpop.permute.xlu0 %612 }
 0x14c   : > { %v618_v46 = vsel %vm589_vm2, %v613_v44, 0 }
 0x14d   : > { %v730_v47 = vunpack.c.l.b16 %v582_v43  ;;  %627 = vmatpush.bf16.xpose.msra.mxu2 %v618_v46 }
 0x14f   : > { %v2168_v49 = vpack.c.b16 %v730_v47, %v730_v47 }
 0x151   : > { %756 = vrot.lane.b32.xlu1 %v2166_v48, %s1957_s13  ;;  %732 = vrot.lane.b32.xlu2 %v2168_v49, %s1957_s13 }
 0x152   : > { %684 = vrot.lane.b32.xlu0 %v2170_v50, %s1957_s13 }
 0x154   : > { %1543 = vmatmul.msk.bf16.vlgmr.msra.gmra.mxu2 %vm589_vm2, %v577_v18 }
 0x159   : > { %903 = vrot.lane.b32.xlu1 %v611_v22, %s1958_s29  ;;  %924 = vrot.lane.b32.xlu2 %v635_v30, %s1958_s29 }
 0x15a   : > { %881 = vrot.lane.b32.xlu0 %v586_v21, %s1958_s29 }
 0x1ab   : > { %v733_v51 = vpop.permute.xlu2 %732 }
 0x1ac   : > { %v738_v54 = vsel %vm589_vm2, %v733_v51, 0 }
 0x1b3   : > { %v637_v52 = vpop.permute.xlu1 %636  ;;  %v925_v56 = vpop.permute.xlu2 %924 }
 0x1b4   : > { %v642_v53 = vsel %vm589_vm2, %v637_v52, 0  ;;  %v930_v60 = vsel %vm886_vm3, %v925_v56, 0 }
 0x1b5   : > { %651 = vmatpush.bf16.xpose.msra.mxu3 %v642_v53 }
 0x1b8   : > { %v605_v55 = vpop.f32.mrf.mxu1 }
 0x1b9   : > { %v777_v57 = vmul.f32 0.35355338, %v605_v55 }
 0x1bb   : > { %v709_v58 = vpop.permute.xlu1 %708  ;;  %v785_v59 = vsel %vm589_vm2, %v777_v57, -inf }
 0x1bc   : > { %v661_v61 = vpop.permute.xlu0 %660  ;;  %1544 = vmatmul.msk.bf16.vlgmr.msra.gmra.mxu3 %vm589_vm2, %v578_v28  ;;  %786 = vmax.xlane.f32.xlu1 %v785_v59  ;;  %v714_v62 = vsel %vm589_vm2, %v709_v58, 0 }
 0x1bd   : > { %747 = vmatpush.bf16.xpose.msrb.mxu3 %v738_v54  ;;  %v666_v63 = vsel %vm589_vm2, %v661_v61, 0  ;;  %723 = vmatpush.bf16.xpose.msrb.mxu2 %v714_v62 }
 0x1be   : > { %675 = vmatpush.bf16.xpose.msrb.mxu0 %v666_v63 }
 0x1c0   : > { %v607_v0 = vpop.f32.mrf.mxu1 }
 0x1c3   : > { %v757_v1 = vpop.permute.xlu1 %756 }
 0x1c4   : > { %v762_v2 = vsel %vm589_vm2, %v757_v1, 0  ;;  %v685_v3 = vpop.permute.xlu0 %684  ;;  %1547 = vmatmul.msk.bf16.vlgmr.msrb.gmra.mxu2 %vm589_vm2, %v581_v32 }
 0x1c5   : > { %939 = vmatpush.bf16.msra.mxu3 %v930_v60  ;;  %1545 = vmatmul.msk.bf16.vlgmr.msrb.gmra.mxu0 %vm589_vm2, %v579_v34  ;;  %v690_v4 = vsel %vm589_vm2, %v685_v3, 0 }
 0x1c6   : > { %699 = vmatpush.bf16.xpose.msrb.mxu1 %v690_v4  ;;  %771 = vmatpush.bf16.xpose.msra.mxu0 %v762_v2 }
 0x1cb   : > { %v904_v5 = vpop.permute.xlu1 %903 }
 0x1cc   : > { %v909_v6 = vsel %vm886_vm3, %v904_v5, 0  ;;  %v882_v7 = vpop.permute.xlu0 %881  ;;  %1548 = vmatmul.msk.bf16.vlgmr.msrb.gmra.mxu3 %vm589_vm2, %v582_v43 }
 0x1cd   : > { %v888_v8 = vsel %vm886_vm3, %v882_v7, 0  ;;  %1546 = vmatmul.msk.bf16.vlgmr.msrb.gmra.mxu1 %vm589_vm2, %v580_v39  ;;  %918 = vmatpush.bf16.msra.mxu2 %v909_v6 }
 0x1ce   : > { %897 = vmatpush.bf16.msra.mxu1 %v888_v8 }
 0x1d5   : > { %1549 = vmatmul.msk.bf16.vlgmr.msra.gmra.mxu0 %vm589_vm2, %v2157_v37  ;;  %945 = vrot.lane.b32.xlu1 %v659_v40, %s1958_s29 }
 0x1d7   : > { %v629_v11 = vpop.f32.mrf.mxu2 }
 0x1d8   : > { %v778_v12 = vmul.f32 0.35355338, %v629_v11 }
 0x1da   : > { %v788_v13 = vsel %vm589_vm2, %v778_v12, -inf }
 0x1db   : > { %789 = vmax.xlane.f32.xlu2 %v788_v13 }
 0x1df   : > { %v631_v14 = vpop.f32.mrf.mxu2 }
 0x22f   : > { %v787_v15 = vpop.xlane.xlu1 %786 }
 0x230   : > { %v809_v16 = vsub.f32 %v777_v57, %v787_v15 }
 0x232   : > { %v817_v18 = vmul.f32 1.442695, %v809_v16 }
 0x234   : > { %1724 = vpow2.f32 %v817_v18 }
 0x23a   : > { %v1725_v28 = vpop.eup %1724 }
 0x23b   : > { %v833_v32 = vsel %vm589_vm2, %v1725_v28, 0.0 }
 0x23f   : > { %v653_v17 = vpop.f32.mrf.mxu3 }
 0x240   : > { %v779_v19 = vmul.f32 0.35355338, %v653_v17 }
 0x242   : > { %v677_v20 = vpop.f32.mrf.mxu0  ;;  %v791_v21 = vsel %vm589_vm2, %v779_v19, -inf }
 0x243   : > { %v780_v22 = vmul.f32 0.35355338, %v677_v20  ;;  %792 = vmax.xlane.f32.xlu0 %v791_v21 }
 0x245   : > { %v794_v23 = vsel %vm589_vm2, %v780_v22, -inf }
 0x246   : > { %795 = vmax.xlane.f32.xlu2 %v794_v23 }
 0x247   : > { %v655_v24 = vpop.f32.mrf.mxu3  ;;  %v725_v25 = vpop.f32.mrf.mxu2 }
 0x248   : > { %v946_v26 = vpop.permute.xlu1 %945  ;;  %v782_v40 = vmul.f32 0.35355338, %v725_v25 }
 0x249   : > { %v951_v27 = vsel %vm886_vm3, %v946_v26, 0 }
 0x24a   : > { %v679_v29 = vpop.f32.mrf.mxu0  ;;  %v701_v30 = vpop.f32.mrf.mxu1  ;;  %960 = vmatpush.bf16.msrb.mxu0 %v951_v27  ;;  %v800_v45 = vsel %vm589_vm2, %v782_v40, -inf }
 0x24b   : > { %v781_v31 = vmul.f32 0.35355338, %v701_v30 }
 0x24d   : > { %v797_v33 = vsel %vm589_vm2, %v781_v31, -inf }
 0x24e   : > { %834 = vadd.xlane.f32.xlu2 %v833_v32  ;;  %798 = vmax.xlane.f32.xlu1 %v797_v33  ;;  %v790_v34 = vpop.xlane.xlu2 %789 }
 0x24f   : > { %v810_v35 = vsub.f32 %v778_v12, %v790_v34  ;;  %v727_v36 = vpop.f32.mrf.mxu2  ;;  %v749_v37 = vpop.f32.mrf.mxu3 }
 0x250   : > { %v783_v39 = vmul.f32 0.35355338, %v749_v37 }
 0x251   : > { %v819_v41 = vmul.f32 1.442695, %v810_v35 }
 0x252   : > { %v703_v42 = vpop.f32.mrf.mxu1  ;;  %v773_v43 = vpop.f32.mrf.mxu0  ;;  %v803_v44 = vsel %vm589_vm2, %v783_v39, -inf }
 0x253   : > { %1726 = vpow2.f32 %v819_v41  ;;  %804 = vmax.xlane.f32.xlu0 %v803_v44  ;;  %v784_v51 = vmul.f32 0.35355338, %v773_v43 }
 0x255   : > { %v806_v54 = vsel %vm589_vm2, %v784_v51, -inf }
 0x256   : > { %801 = vmax.xlane.f32.xlu2 %v800_v45 }
 0x257   : > { %v751_v46 = vpop.f32.mrf.mxu3 }
 0x259   : > { %v1727_v47 = vpop.eup %1726 }
 0x25a   : > { %v775_v52 = vpop.f32.mrf.mxu0  ;;  %v836_v53 = vsel %vm589_vm2, %v1727_v47, 0.0 }
 0x25b   : > { %837 = vadd.xlane.f32.xlu0 %v836_v53 }
 0x25e   : > { %807 = vmax.xlane.f32.xlu2 %v806_v54 }
 0x276   : > { %987 = vrot.lane.b32.xlu2 %v2159_v38, %s1958_s29 }
 0x2b6   : > { %v793_v58 = vpop.xlane.xlu0 %792 }
 0x2b7   : > { %v811_v63 = vsub.f32 %v779_v19, %v793_v58 }
 0x2b9   : > { %v796_v55 = vpop.xlane.xlu2 %795  ;;  %v821_v38 = vmul.f32 1.442695, %v811_v63 }
 0x2ba   : > { %v812_v56 = vsub.f32 %v780_v22, %v796_v55 }
 0x2bc   : > { %v823_v57 = vmul.f32 1.442695, %v812_v56 }
 0x2be   : > { %1728 = vpow2.f32 %v823_v57 }
 0x2c1   : > { %v799_v59 = vpop.xlane.xlu1 %798  ;;  %v835_v60 = vpop.xlane.xlu2 %834 }
 0x2c2   : > { %v813_v61 = vsub.f32 %v781_v31, %v799_v59  ;;  %1730 = vrcp.f32 %v835_v60 }
 0x2c4   : > { %v1729_v62 = vpop.eup %1728  ;;  %v825_v0 = vmul.f32 1.442695, %v813_v61 }
 0x2c5   : > { %v842_v1 = vsel %vm589_vm2, %v1729_v62, 0.0 }
 0x2c6   : > { %1732 = vpow2.f32 %v825_v0  ;;  %843 = vadd.xlane.f32.xlu0 %v842_v1  ;;  %v805_v2 = vpop.xlane.xlu0 %804 }
 0x2c7   : > { %v815_v3 = vsub.f32 %v783_v39, %v805_v2 }
 0x2c8   : > { %v1731_v4 = vpop.eup %1730 }
 0x2c9   : > { %v865_v5 = vmul.f32 %v1731_v4, %v1725_v28  ;;  %v829_v6 = vmul.f32 1.442695, %v815_v3  ;;  %v802_v7 = vpop.xlane.xlu2 %801 }
 0x2ca   : > { %v814_v8 = vsub.f32 %v782_v40, %v802_v7 }
 0x2cb   : > { %v873_v11 = vpack.c.bf16 %v865_v5, %v865_v5  ;;  %1734 = vpow2.f32 %v829_v6 }
 0x2cc   : > { %v2213_v12 = vpop.eup %1732  ;;  %1736 = vpow2.f32 %v821_v38  ;;  %v827_v13 = vmul.f32 1.442695, %v814_v8 }
 0x2cd   : > { %1550 = vmatmul.msk.bf16.vlgmr.msra.gmra.mxu1 %vm589_vm2, %v873_v11  ;;  %v845_v14 = vsel %vm589_vm2, %v2213_v12, 0.0 }
 0x2ce   : > { %1738 = vpow2.f32 %v827_v13  ;;  %846 = vadd.xlane.f32.xlu1 %v845_v14  ;;  %v838_v15 = vpop.xlane.xlu0 %837 }
 0x2cf   : > { %1740 = vrcp.f32 %v838_v15 }
 0x2d1   : > { %v1735_v16 = vpop.eup %1734  ;;  %v808_v17 = vpop.xlane.xlu2 %807 }
 0x2d2   : > { %v1737_v18 = vpop.eup %1736  ;;  %v816_v19 = vsub.f32 %v784_v51, %v808_v17  ;;  %v851_v20 = vsel %vm589_vm2, %v1735_v16, 0.0 }
 0x2d3   : > { %852 = vadd.xlane.f32.xlu2 %v851_v20  ;;  %v839_v24 = vsel %vm589_vm2, %v1737_v18, 0.0  ;;  %v1604_v20 = vld [vmem:[%s2125_s18] sm:$0xff] }
 0x2d4   : > { %v1739_v21 = vpop.eup %1738  ;;  %v831_v22 = vmul.f32 1.442695, %v816_v19  ;;  %v1605_v19 = vld [vmem:[%s2125_s18 + $0x8] sm:$0xff] }
 0x2d5   : > { %v1741_v23 = vpop.eup %1740  ;;  %v848_v25 = vsel %vm589_vm2, %v1739_v21, 0.0 }
 0x2d6   : > { %v866_v26 = vmul.f32 %v1741_v23, %v1727_v47  ;;  %1742 = vpow2.f32 %v831_v22  ;;  %840 = vadd.xlane.f32.xlu1 %v839_v24  ;;  %849 = vadd.xlane.f32.xlu0 %v848_v25 }
 0x2d8   : > { %v874_v27 = vpack.c.bf16 %v866_v26, %v866_v26 }
 0x2d9   : > { %v988_v28 = vpop.permute.xlu2 %987 }
 0x2da   : > { %v993_v29 = vsel %vm886_vm3, %v988_v28, 0  ;;  %1551 = vmatmul.msk.bf16.vlgmr.msra.gmra.mxu2 %vm589_vm2, %v874_v27 }
 0x2db   : > { %1002 = vmatpush.bf16.msrb.mxu2 %v993_v29 }
 0x2dc   : > { %v1743_v30 = vpop.eup %1742 }
 0x2dd   : > { %v854_v31 = vsel %vm589_vm2, %v1743_v30, 0.0 }
 0x2de   : > { %855 = vadd.xlane.f32.xlu0 %v854_v31 }
 0x2eb   : > { %1029 = vrot.lane.b32.xlu2 %v2166_v48, %s1958_s29 }
 0x2ef   : > { %1008 = vrot.lane.b32.xlu1 %v2168_v49, %s1958_s29 }
 0x2f2   : > { %966 = vrot.lane.b32.xlu0 %v2170_v50, %s1958_s29 }
 0x339   : > { %v844_v32 = vpop.xlane.xlu0 %843 }
 0x33a   : > { %1744 = vrcp.f32 %v844_v32 }
 0x340   : > { %v1745_v33 = vpop.eup %1744 }
 0x341   : > { %v868_v34 = vmul.f32 %v1745_v33, %v1729_v62  ;;  %v847_v35 = vpop.xlane.xlu1 %846 }
 0x343   : > { %v876_v36 = vpack.c.bf16 %v868_v34, %v868_v34 }
 0x345   : > { %1553 = vmatmul.msk.bf16.vlgmr.msrb.gmra.mxu0 %vm589_vm2, %v876_v36 }
 0x346   : > { %v853_v37 = vpop.xlane.xlu2 %852 }
 0x349   : > { %v841_v39 = vpop.xlane.xlu1 %840  ;;  %v850_v40 = vpop.xlane.xlu0 %849 }
 0x34a   : > { %1746 = vrcp.f32 %v841_v39  ;;  %v2231_v41 = vpop.f32.mrf.mxu1 }
 0x34b   : > { %1748 = vrcp.f32 %v850_v40 }
 0x34e   : > { %v1030_v48 = vpop.permute.xlu2 %1029 }
 0x34f   : > { %v1035_v49 = vsel %vm886_vm3, %v1030_v48, 0 }
 0x350   : > { %v1747_v42 = vpop.eup %1746  ;;  %1044 = vmatpush.bf16.msra.mxu0 %v1035_v49 }
 0x351   : > { %v1749_v50 = vpop.eup %1748  ;;  %v867_v43 = vmul.f32 %v1747_v42, %v1737_v18  ;;  %v856_v44 = vpop.xlane.xlu0 %855 }
 0x352   : > { %v870_v45 = vmul.f32 %v1749_v50, %v1739_v21  ;;  %1750 = vrcp.f32 %v856_v44  ;;  %v901_v46 = vpop.f32.mrf.mxu1 }
 0x353   : > { %v875_v47 = vpack.c.bf16 %v867_v43, %v867_v43  ;;  %1752 = vrcp.f32 %v853_v37  ;;  %v2249_v37 = vld [vmem:[%s2142_s27] sm:$0x3f] }
 0x354   : > { %v878_v51 = vpack.c.bf16 %v870_v45, %v870_v45  ;;  %1754 = vrcp.f32 %v847_v35  ;;  %v1088_v39 = vperm.slane %v2249_v37, 0  ;;  %v1962_v45 = vmov 32.0  }
 0x355   : > { %1552 = vmatmul.msk.bf16.vlgmr.msra.gmra.mxu3 %vm589_vm2, %v875_v47  ;;  %1756 = vrcp.f32 %v1962_v45 }
 0x356   : > { %1555 = vmatmul.msk.bf16.vlgmr.msrb.gmra.mxu2 %vm589_vm2, %v878_v51 }
 0x358   : > { %v1751_v52 = vpop.eup %1750 }
 0x359   : > { %v872_v53 = vmul.f32 %v1751_v52, %v1743_v30  ;;  %v1753_v55 = vpop.eup %1752 }
 0x35a   : > { %v1755_v57 = vpop.eup %1754  ;;  %v871_v58 = vmul.f32 %v1753_v55, %v1735_v16 }
 0x35b   : > { %v880_v54 = vpack.c.bf16 %v872_v53, %v872_v53  ;;  %v869_v61 = vmul.f32 %v1755_v57, %v2213_v12  ;;  %v1757_v46 = vpop.eup %1756 }
 0x35c   : > { %v879_v62 = vpack.c.bf16 %v871_v58, %v871_v58  ;;  %v1127_v47 = vmul.f32 32.0, %v1757_v46  ;;  %vm1131_vm6 = vweird.f32 %v1757_v46 }
 0x35d   : > { %1557 = vmatmul.msk.bf16.vlgmr.msra.gmra.mxu0 %vm589_vm2, %v880_v54  ;;  %v920_v56 = vpop.f32.mrf.mxu2  ;;  %v877_v2 = vpack.c.bf16 %v869_v61, %v869_v61 }
 0x35e   : > { %v1128_v51 = vsub.f32 1.0, %v1127_v47 }
 0x360   : > { %v1129_v52 = vmul.f32 %v1757_v46, %v1128_v51 }
 0x361   : > { %v1009_v59 = vpop.permute.xlu1 %1008 }
 0x362   : > { %v1014_v60 = vsel %vm886_vm3, %v1009_v59, 0  ;;  %v1130_v53 = vadd.f32 %v1757_v46, %v1129_v52 }
 0x363   : > { %1023 = vmatpush.bf16.msrb.mxu3 %v1014_v60 }
 0x364   : > { %v967_v63 = vpop.permute.xlu0 %966 }
 0x365   : > { %v972_v0 = vsel %vm886_vm3, %v967_v63, 0  ;;  %v922_v1 = vpop.f32.mrf.mxu2  ;;  %v1607_v63 = vld [vmem:[%s2130_s1 + $0x8] sm:$0xff] }
 0x366   : > { %981 = vmatpush.bf16.msrb.mxu1 %v972_v0  ;;  %1556 = vmatmul.msk.bf16.vlgmr.msrb.gmra.mxu3 %vm589_vm2, %v879_v62 }
 0x367   : > { %1207 = vmatpush.bf16.msra.mxu2 %v1607_v63 }
 0x369   : > { %1554 = vmatmul.msk.bf16.vlgmr.msrb.gmra.mxu1 %vm589_vm2, %v877_v2 }
 0x36a   : > { %1110 = vmatpush.bf16.msra.mxu1 %v1605_v19 }
 0x36e   : > { %1111 = vmatpush.bf16.msra.mxu1 %v1604_v20  ;;  %v1171_v20 = vperm.slane %v2249_v37, 1 }
 0x3c2   : > { %v962_v3 = vpop.f32.mrf.mxu0 }
 0x3ca   : > { %v964_v4 = vpop.f32.mrf.mxu0 }
 0x3d8   : > { %v941_v38 = vpop.f32.mrf.mxu3 }
 0x3d9   : > { %v1707_v5 = vpack.i.bf16 %v962_v3, %v941_v38  ;;  %v1004_v6 = vpop.f32.mrf.mxu2  ;;  %v1606_v3 = vld [vmem:[%s2130_s1] sm:$0xff] }
 0x3da   : > { %v1046_v7 = vpop.f32.mrf.mxu0  ;;  %1208 = vmatpush.bf16.msra.mxu2 %v1606_v3 }
 0x3db   : > { %1708 = vrot.lane.b32.xlu0 %v1707_v5, %s1959_s21 }
 0x3e0   : > { %v943_v8 = vpop.f32.mrf.mxu3 }
 0x3e1   : > { %v1006_v11 = vpop.f32.mrf.mxu2 }
 0x3e2   : > { %v1048_v12 = vpop.f32.mrf.mxu0 }
 0x3e6   : > { %v983_v13 = vpop.f32.mrf.mxu1 }
 0x3e7   : > { %v1712_v14 = vpack.i.bf16 %v1004_v6, %v983_v13 }
 0x3e9   : > { %1713 = vrot.lane.b32.xlu1 %v1712_v14, %s1960_s23  ;;  %v1025_v15 = vpop.f32.mrf.mxu3 }
 0x3ea   : > { %v1717_v16 = vpack.i.bf16 %v1046_v7, %v1025_v15 }
 0x3ec   : > { %1718 = vrot.lane.b32.xlu2 %v1717_v16, %s1961_s25 }
 0x3ee   : > { %v985_v17 = vpop.f32.mrf.mxu1 }
 0x3f1   : > { %v1027_v18 = vpop.f32.mrf.mxu3 }
 0x446   : > { %v1719_v24 = vpop.permute.xlu2 %1718 }
 0x447   : > { %v1721_v28 = vunpack.i.h.bf16 %v1719_v24  ;;  %v1720_v29 = vunpack.i.l.bf16 %v1719_v24  ;;  %v1174_v24 = vperm.slane %v2249_v37, 2 }
 0x44d   : > { %v1709_v21 = vpop.permute.xlu0 %1708 }
 0x44e   : > { %v1711_v22 = vunpack.i.h.bf16 %v1709_v21  ;;  %v1710_v23 = vunpack.i.l.bf16 %v1709_v21 }
 0x450   : > { %v1075_v30 = vsel %vm589_vm2, %v920_v56, %v1711_v22  ;;  %v1074_v31 = vsel %vm589_vm2, %v2231_v41, %v1710_v23 }
 0x45b   : > { %v1714_v25 = vpop.permute.xlu1 %1713 }
 0x45c   : > { %v1716_v26 = vunpack.i.h.bf16 %v1714_v25  ;;  %v1715_v27 = vunpack.i.l.bf16 %v1714_v25 }
 0x45e   : > { %v1078_v32 = vsel %vm1076_vm4, %v1075_v30, %v1716_v26  ;;  %v1077_v33 = vsel %vm1076_vm4, %v1074_v31, %v1715_v27  ;;  %v1611_v31 = vld [vmem:[%s2136_s24 + $0x18] sm:$0xff] }
 0x45f   : > { %v1080_v34 = vsel %vm1079_vm5, %v1077_v33, %v1720_v29  ;;  %v1081_v35 = vsel %vm1079_vm5, %v1078_v32, %v1721_v28  ;;  %1259 = vmatpush.bf16.msra.mxu3 %v1611_v31  ;;  %v1610_v32 = vld [vmem:[%s2136_s24 + $0x10] sm:$0xff]  ;;  %v1609_v33 = vld [vmem:[%s2136_s24 + $0x8] sm:$0xff] }
 0x460   : > { %v1083_v36 = vpack.c.bf16 %v1081_v35, %v1080_v34  ;;  %v1608_v34 = vld [vmem:[%s2136_s24] sm:$0xff] }
 0x462   : > { %1566 = vmatmul.msk.bf16.vlgmr.msra.gmra.mxu1 %vm538_vm1, %v1083_v36  ;;  %v1723_v36 = vld [vmem:[%s2104_s19] ss:$0 sm:$0xff] }
 0x463   : > { %1260 = vmatpush.bf16.msra.mxu3 %v1610_v32 }
 0x467   : > { %1261 = vmatpush.bf16.msra.mxu3 %v1609_v33 }
 0x46b   : > { %1262 = vmatpush.bf16.msra.mxu3 %v1608_v34 }
 0x4df   : > { %v1113_v40 = vpop.f32.mrf.mxu1 }
 0x4e0   : > { %v1114_v48 = vadd.f32 %v1113_v40, %v1088_v39 }
 0x4e2   : > { %v1118_v49 = vadd.f32 %v1114_v48, %v2145_v9  ;;  %v2256_v9 = vsel %vm1131_vm6, %v1757_v46, %v1130_v53 }
 0x4e4   : > { %v1120_v42 = vsel %vm538_vm1, %v1118_v49, 0.0 }
 0x4e5   : > { %1121 = vadd.xlane.f32.xlu0 %v1120_v42 }
 0x4e7   : > { %v1115_v50 = vpop.f32.mrf.mxu1 }
 0x4e8   : > { %v1116_v41 = vadd.f32 %v1115_v50, %v1088_v39 }
 0x4ea   : > { %v1119_v43 = vadd.f32 %v1116_v41, %v2147_v10  ;;  %v1226_v41 = vperm.slane %v2249_v37, 3 }
 0x4ec   : > { %v1123_v44 = vsel %vm538_vm1, %v1119_v43, 0.0 }
 0x4ed   : > { %1124 = vadd.xlane.f32.xlu1 %v1123_v44 }
 0x558   : > { %v1122_v54 = vpop.xlane.xlu0 %1121 }
 0x559   : > { %v1133_v55 = vmul.f32 %v2256_v9, %v1122_v54 }
 0x55b   : > { %v1135_v56 = vsub.f32 %v1118_v49, %v1133_v55 }
 0x55d   : > { %v1137_v10 = vmul.f32 %v1135_v56, %v1135_v56 }
 0x55f   : > { %v1139_v57 = vsel %vm538_vm1, %v1137_v10, 0.0 }
 0x560   : > { %v1125_v58 = vpop.xlane.xlu1 %1124  ;;  %1140 = vadd.xlane.f32.xlu2 %v1139_v57 }
 0x561   : > { %v1134_v59 = vmul.f32 %v2256_v9, %v1125_v58 }
 0x563   : > { %v1136_v60 = vsub.f32 %v1119_v43, %v1134_v59 }
 0x565   : > { %v1138_v61 = vmul.f32 %v1136_v60, %v1136_v60 }
 0x567   : > { %v1142_v62 = vsel %vm538_vm1, %v1138_v61, 0.0 }
 0x568   : > { %1143 = vadd.xlane.f32.xlu0 %v1142_v62 }
 0x5d3   : > { %v1141_v0 = vpop.xlane.xlu2 %1140 }
 0x5d4   : > { %v1145_v1 = vmul.f32 %v1141_v0, %v2256_v9 }
 0x5d6   : > { %v1147_v2 = vadd.f32 1e-05, %v1145_v1 }
 0x5d8   : > { %1758 = vrsqrt.f32 %v1147_v2  ;;  %vm1155_vm8 = vweird.f32 %v1147_v2 }
 0x5db   : > { %v1144_v4 = vpop.xlane.xlu0 %1143 }
 0x5dc   : > { %v1146_v38 = vmul.f32 %v1144_v4, %v2256_v9 }
 0x5de   : > { %v1759_v5 = vpop.eup %1758  ;;  %v1148_v6 = vadd.f32 1e-05, %v1146_v38 }
 0x5df   : > { %v1150_v7 = vmul.f32 %v1759_v5, %v1147_v2  ;;  %vm1156_vm7 = vweird.f32 %v1759_v5 }
 0x5e0   : > { %1760 = vrsqrt.f32 %v1148_v6  ;;  %vm1157_vm9 = vmor %vm1155_vm8, %vm1156_vm7  ;;  %vm1165_vm11 = vweird.f32 %v1148_v6 }
 0x5e1   : > { %v1151_v8 = vmul.f32 %v1759_v5, %v1150_v7 }
 0x5e3   : > { %v1152_v11 = vmul.f32 0.5, %v1151_v8 }
 0x5e5   : > { %v1153_v12 = vsub.f32 1.5, %v1152_v11 }
 0x5e6   : > { %v1761_v13 = vpop.eup %1760 }
 0x5e7   : > { %v1154_v14 = vmul.f32 %v1759_v5, %v1153_v12  ;;  %v1160_v15 = vmul.f32 %v1761_v13, %v1148_v6  ;;  %vm1166_vm10 = vweird.f32 %v1761_v13 }
 0x5e8   : > { %vm1167_vm12 = vmor %vm1165_vm11, %vm1166_vm10 }
 0x5e9   : > { %v1161_v16 = vmul.f32 %v1761_v13, %v1160_v15  ;;  %v1158_v17 = vsel %vm1157_vm9, %v1759_v5, %v1154_v14  ;;  %v1315_v14 = vperm.slane %v2249_v37, 4 }
 0x5ea   : > { %v1169_v21 = vmul.f32 %v1158_v17, %v1135_v56  ;;  %v1318_v17 = vperm.slane %v2249_v37, 5 }
 0x5eb   : > { %v1162_v18 = vmul.f32 0.5, %v1161_v16 }
 0x5ec   : > { %v1172_v25 = vmul.f32 %v1171_v20, %v1169_v21 }
 0x5ed   : > { %v1163_v19 = vsub.f32 1.5, %v1162_v18 }
 0x5ee   : > { %v1175_v28 = vadd.f32 %v1174_v24, %v1172_v25 }
 0x5ef   : > { %v1164_v22 = vmul.f32 %v1761_v13, %v1163_v19 }
 0x5f1   : > { %v1168_v23 = vsel %vm1167_vm12, %v1761_v13, %v1164_v22 }
 0x5f2   : > { %v1170_v26 = vmul.f32 %v1168_v23, %v1136_v60 }
 0x5f4   : > { %v1173_v27 = vmul.f32 %v1171_v20, %v1170_v26 }
 0x5f6   : > { %v1176_v29 = vadd.f32 %v1174_v24, %v1173_v27 }
 0x5f8   : > { %v1177_v30 = vpack.c.bf16 %v1176_v29, %v1175_v28 }
 0x5fa   : > { %1575 = vmatmul.msk.bf16.vlgmr.msra.gmra.mxu2 %vm538_vm1, %v1177_v30 }
 0x67d   : > { %v1210_v35 = vpop.f32.mrf.mxu2 }
 0x67e   : > { %v1211_v39 = vadd.f32 %v1723_v36, %v1210_v35 }
 0x680   : > { %v1215_v49 = vmax.f32 %v1211_v39, 0.0 }
 0x685   : > { %v1212_v40 = vpop.f32.mrf.mxu2 }
 0x686   : > { %v1213_v48 = vadd.f32 %v1723_v36, %v1212_v40 }
 0x688   : > { %v1216_v42 = vmax.f32 %v1213_v48, 0.0 }
 0x68a   : > { %v1217_v50 = vpack.c.bf16 %v1216_v42, %v1215_v49 }
 0x68c   : > { %1592 = vmatmul.msk.bf16.vlgmr.msra.gmra.mxu3 %vm1251_vm13, %v1217_v50 }
 0x70f   : > { %v1264_v43 = vpop.f32.mrf.mxu3 }
 0x710   : > { %v1265_v44 = vadd.f32 %v1264_v43, %v1226_v41 }
 0x712   : > { %v1269_v45 = vadd.f32 %v1265_v44, %v1175_v28 }
 0x714   : > { %v1271_v46 = vsel %vm538_vm1, %v1269_v45, 0.0 }
 0x715   : > { %1272 = vadd.xlane.f32.xlu1 %v1271_v46 }
 0x717   : > { %v1266_v47 = vpop.f32.mrf.mxu3 }
 0x718   : > { %v1267_v51 = vadd.f32 %v1266_v47, %v1226_v41 }
 0x71a   : > { %v1270_v52 = vadd.f32 %v1267_v51, %v1176_v29 }
 0x71c   : > { %v1274_v53 = vsel %vm538_vm1, %v1270_v52, 0.0 }
 0x71d   : > { %1275 = vadd.xlane.f32.xlu2 %v1274_v53 }
 0x788   : > { %v1273_v54 = vpop.xlane.xlu1 %1272 }
 0x789   : > { %v1277_v55 = vmul.f32 %v1273_v54, %v2256_v9 }
 0x78b   : > { %v1279_v56 = vsub.f32 %v1269_v45, %v1277_v55 }
 0x78d   : > { %v1281_v10 = vmul.f32 %v1279_v56, %v1279_v56 }
 0x78f   : > { %v1283_v57 = vsel %vm538_vm1, %v1281_v10, 0.0 }
 0x790   : > { %v1276_v58 = vpop.xlane.xlu2 %1275  ;;  %1284 = vadd.xlane.f32.xlu0 %v1283_v57 }
 0x791   : > { %v1278_v59 = vmul.f32 %v1276_v58, %v2256_v9 }
 0x793   : > { %v1280_v60 = vsub.f32 %v1270_v52, %v1278_v59 }
 0x795   : > { %v1282_v61 = vmul.f32 %v1280_v60, %v1280_v60 }
 0x797   : > { %v1286_v62 = vsel %vm538_vm1, %v1282_v61, 0.0 }
 0x798   : > { %1287 = vadd.xlane.f32.xlu1 %v1286_v62 }
 0x803   : > { %v1285_v63 = vpop.xlane.xlu0 %1284 }
 0x804   : > { %v1289_v0 = vmul.f32 %v1285_v63, %v2256_v9 }
 0x806   : > { %v1291_v1 = vadd.f32 1e-05, %v1289_v0 }
 0x808   : > { %1762 = vrsqrt.f32 %v1291_v1  ;;  %vm1299_vm15 = vweird.f32 %v1291_v1 }
 0x80b   : > { %v1288_v2 = vpop.xlane.xlu1 %1287 }
 0x80c   : > { %v1290_v3 = vmul.f32 %v1288_v2, %v2256_v9 }
 0x80e   : > { %v1763_v4 = vpop.eup %1762  ;;  %v1292_v38 = vadd.f32 1e-05, %v1290_v3 }
 0x80f   : > { %v1294_v5 = vmul.f32 %v1763_v4, %v1291_v1  ;;  %vm1300_vm14 = vweird.f32 %v1763_v4 }
 0x810   : > { %1764 = vrsqrt.f32 %v1292_v38  ;;  %vm1301_vm0 = vmor %vm1299_vm15, %vm1300_vm14  ;;  %vm1309_vm3 = vweird.f32 %v1292_v38 }
 0x811   : > { %v1295_v6 = vmul.f32 %v1763_v4, %v1294_v5 }
 0x813   : > { %v1296_v7 = vmul.f32 0.5, %v1295_v6 }
 0x815   : > { %v1297_v8 = vsub.f32 1.5, %v1296_v7 }
 0x816   : > { %v1765_v11 = vpop.eup %1764 }
 0x817   : > { %v1298_v12 = vmul.f32 %v1763_v4, %v1297_v8  ;;  %v1304_v13 = vmul.f32 %v1765_v11, %v1292_v38  ;;  %vm1310_vm2 = vweird.f32 %v1765_v11 }
 0x818   : > { %vm1311_vm4 = vmor %vm1309_vm3, %vm1310_vm2 }
 0x819   : > { %v1302_v15 = vsel %vm1301_vm0, %v1763_v4, %v1298_v12  ;;  %v1305_v16 = vmul.f32 %v1765_v11, %v1304_v13 }
 0x81a   : > { %v1313_v9 = vmul.f32 %v1302_v15, %v1279_v56 }
 0x81b   : > { %v1306_v18 = vmul.f32 0.5, %v1305_v16 }
 0x81c   : > { %v1316_v19 = vmul.f32 %v1315_v14, %v1313_v9 }
 0x81d   : > { %v1307_v20 = vsub.f32 1.5, %v1306_v18 }
 0x81e   : > { %v1319_v21 = vadd.f32 %v1318_v17, %v1316_v19 }
 0x81f   : > { %v1308_v22 = vmul.f32 %v1765_v11, %v1307_v20 }
 0x820   : > { %1321 = vst.msk [vmem:[#allocation2] sm:$0xff] %vm538_vm1, %v1319_v21 }
 0x821   : > { %v1312_v23 = vsel %vm1311_vm4, %v1765_v11, %v1308_v22 }
 0x822   : > { %v1314_v24 = vmul.f32 %v1312_v23, %v1280_v60 }
 0x824   : > { %v1317_v25 = vmul.f32 %v1315_v14, %v1314_v24  ;;  %1326 = sbr.rel (%p1593_p3) target bundleno = 2110 (0x83e), region = 76 }
 0x826   : > { %v1320_v26 = vadd.f32 %v1318_v17, %v1317_v25 }
 0x828   : > { %1322 = vst.msk [vmem:[#allocation2 + $0x8] sm:$0xff] %vm538_vm1, %v1320_v26 }
 0x829   : > { %v1327_v37 = vsel %vm538_vm1, %v1319_v21, 0.0  ;;  %v1334_v27 = vsel %vm538_vm1, %v1320_v26, 0.0  ;;  %v1963_v30 = vmov 8.0   ;;  %vm1352_vm1 = vcmask 1041409  }
 0x82a   : > { %v1328_v28 = vrot.slane %v1327_v37, 4  ;;  %v1335_v29 = vrot.slane %v1334_v27, 4  ;;  %1766 = vrcp.f32 %v1963_v30  ;;  %vm1355_vm6 = vcmask 254976  }
 0x82c   : > { %v1329_v31 = vadd.f32 %v1328_v28, %v1327_v37  ;;  %v1336_v32 = vadd.f32 %v1335_v29, %v1334_v27 }
 0x82e   : > { %v1330_v33 = vrot.slane %v1329_v31, 2  ;;  %v1337_v34 = vrot.slane %v1336_v32, 2 }
 0x830   : > { %v1767_v35 = vpop.eup %1766  ;;  %v1331_v36 = vadd.f32 %v1330_v33, %v1329_v31  ;;  %v1338_v39 = vadd.f32 %v1337_v34, %v1336_v32 }
 0x831   : > { %v1342_v40 = vmul.f32 8.0, %v1767_v35  ;;  %vm1346_vm5 = vweird.f32 %v1767_v35 }
 0x832   : > { %v1332_v48 = vrot.slane %v1331_v36, 1  ;;  %v1339_v49 = vrot.slane %v1338_v39, 1 }
 0x833   : > { %v1343_v42 = vsub.f32 1.0, %v1342_v40 }
 0x834   : > { %v1333_v41 = vadd.f32 %v1332_v48, %v1331_v36  ;;  %v1340_v43 = vadd.f32 %v1339_v49, %v1338_v39 }
 0x835   : > { %v1344_v50 = vmul.f32 %v1767_v35, %v1343_v42 }
 0x837   : > { %v1345_v44 = vadd.f32 %v1767_v35, %v1344_v50 }
 0x839   : > { %v1347_v45 = vsel %vm1346_vm5, %v1767_v35, %v1345_v44 }
 0x83a   : > { %v1348_v46 = vmul.f32 %v1347_v45, %v1333_v41  ;;  %v1349_v47 = vmul.f32 %v1347_v45, %v1340_v43 }
 0x83c   : > { %v1353_v51 = vsel %vm1352_vm1, %v1349_v47, %v1348_v46 }
 0x83d   : > { %1356 = vst.msk [vmem:[#allocation9] sm:$0x3] %vm1355_vm6, %v1353_v51 }
 0x83e PF: > { %p1642_p4 = scmp.eq.s32.totalorder %s2046_s15, 1  ;;  %s1367_s19 = sshll.u32 %s2321_s9, 4  ;;  %s1368_s19 = int_to_ptr.hbm [resolvable:$true] %s1367_s19 }
 0x83f   : > { %s1964_s28 = smov [#allocation9]  }
 0x840   : > { %s1365_s17 = sshll.u32 %s1964_s28, 4  ;;  %s1366_s17 = int_to_ptr.vmem [resolvable:$true] %s1365_s17 }
 0x841   : > { %1623 = dma.vmem_to_hbm [thread:$0]  (%p1642_p4), %s1366_s17, 32, %s1368_s19, [#allocation5]  }
 0x842   : > { %1923 = dma.done.wait (%p1642_p4), [#allocation5], 32  }
 0x843   : > { %1925 = vsyncadd (%p1642_p4), [#allocation5], 4294967264 }
 0x844 PF: > { %s22_s14 = sadd.s32 1, %s1948_s14   ;;  %s2336_s12 = sld [smem:[#allocation14_spill]] }
 0x845   : > { %p19_p5 = scmp.ge.s32.totalorder %s22_s14, 4   ;;  %s2337_s13 = sld [smem:[#allocation15_spill]] }
 0x846   : > { %s2338_s30 = smov %s1932_s10  ;;  %s2339_s10 = smov %s1936_s11 }
 0x847   : > { %s2340_s11 = smov %s2086_s22  ;;  %21 = sbr.rel (!%p19_p5) target bundleno = 10 (0xa), region = 128 }
 0x84c   :  { %1381 = vsyncpa [#allocation4], 1 }
 0x84d   :  { %1383 = vsyncpa [#allocation4 + $0x1], 1 }
 0x84e   :  { %1384 = vsyncpa [#allocation7], 1 }
 0x84f   :  { %1385 = vsyncpa [#allocation5], 1 }
 0x850   :  { %1387 = vsyncpa [#allocation5 + $0x1], 1 }

</bundles_post_ra>
